<compile_context>
chip_gen: v5e
topology: v5e:2x2
jax: 0.10.0
libtpu: 0.0.40
codegen_flags: <defaults>
</compile_context>

<pallas_src>
import jax
import jax.numpy as jnp
from jax.experimental import pallas as pl
from jax.experimental.pallas import tpu as pltpu


def _cross_interaction_kernel(x0_ref, h_ref, w_ref, b_ref, out_ref):
    # x0_ref, h_ref, out_ref: (TB, D)   w_ref, b_ref: (1, D)
    # Row score: multiply in the native dtype (bf16-native VPU on v6e/v7x),
    # accumulate the lane-reduce in f32.  No whole-tile f32 copy of h.
    prod = h_ref[...] * w_ref[...]                                   # (TB, D)
    score = jnp.sum(prod, axis=-1, keepdims=True, dtype=jnp.float32)  # (TB, 1) f32
    # Keep the score in f32 through the FMA (f32 * bf16 promotes to f32);
    # downcast only the final result.
    out = score * x0_ref[...] + b_ref[...]
    out_ref[...] = out.astype(out_ref.dtype)


def _vmem_capacity_bytes():
    try:
        return int(pltpu.get_tpu_info().vmem_capacity_bytes)
    except Exception:
        return 64 * 1024 * 1024  # conservative fallback (v7x-sized)


def cross_interaction_layer(input_embeddings, hidden_states, weight, bias, *,
                            block_rows=None):
    """input_embeddings, hidden_states: (B, D); weight: (1, D); bias: (D,)."""
    B, D = input_embeddings.shape
    assert hidden_states.shape == (B, D)
    dtype = input_embeddings.dtype
    itemsize = jnp.dtype(dtype).itemsize
    sublane = {4: 8, 2: 16, 1: 32}.get(itemsize, 8)

    # --- lane-dense feature dim: pad D up to a multiple of 128 --------------
    # Zero padding does not change the score (0-weight columns) nor the kept
    # output columns; padded columns are sliced off below.
    D_pad = ((D + 127) // 128) * 128
    w2d = weight.reshape(1, D)
    b2d = bias.reshape(1, D)
    if D_pad != D:
        pad = ((0, 0), (0, D_pad - D))
        x0 = jnp.pad(input_embeddings, pad)
        h = jnp.pad(hidden_states, pad)
        w2d = jnp.pad(w2d, pad)
        b2d = jnp.pad(b2d, pad)
    else:
        x0, h = input_embeddings, hidden_states

    # --- generation-aware VMEM budget ---------------------------------------
    cap = _vmem_capacity_bytes()
    if cap >= (96 << 20):            # 128 MiB parts: v5e / v6e
        footprint_budget = 72 << 20
        limit_cap = 100 << 20
    else:                            # 64 MiB parts: v7x
        footprint_budget = 36 << 20
        limit_cap = 56 << 20

    # Bytes per batch row: double-buffered streamed tiles (x0, h, out) plus
    # the f32 promoted intermediates created inside the kernel body.
    stream_row = 3 * D_pad * itemsize      # x0 + h + out, per buffer copy
    temp_row = 2 * D_pad * 4               # f32 body intermediates (~2 tiles)
    bytes_per_row = 2 * stream_row + temp_row

    # --- pick batch tile (sized by bytes, no hard row cap) ------------------
    if block_rows is None:
        tb = footprint_budget // bytes_per_row
    else:
        tb = int(block_rows)
    if tb >= B:
        tb = B                                        # full-extent block is legal
    else:
        tb = max(sublane, (tb // sublane) * sublane)  # satisfy sublane rule

    grid = (pl.cdiv(B, tb),)

    # --- VMEM limit / cost hint ----------------------------------------------
    vmem_needed = 2 * stream_row * tb + temp_row * tb + 4 * D_pad * 4 + (2 << 20)
    vmem_limit = int(min(vmem_needed, limit_cap))

    cost = pl.CostEstimate(
        flops=4 * B * D_pad,
        transcendentals=0,
        bytes_accessed=3 * B * D_pad * itemsize + 2 * D_pad * itemsize,
    )

    out = pl.pallas_call(
        _cross_interaction_kernel,
        out_shape=jax.ShapeDtypeStruct((B, D_pad), dtype),
        grid=grid,
        in_specs=[
            pl.BlockSpec((tb, D_pad), lambda i: (i, 0)),   # x0 tile
            pl.BlockSpec((tb, D_pad), lambda i: (i, 0)),   # h tile
            pl.BlockSpec((1, D_pad), lambda i: (0, 0)),    # weight (resident)
            pl.BlockSpec((1, D_pad), lambda i: (0, 0)),    # bias   (resident)
        ],
        out_specs=pl.BlockSpec((tb, D_pad), lambda i: (i, 0)),
        compiler_params=pltpu.CompilerParams(
            # "parallel" shards the batch grid axis across both TensorCores on
            # v7x (megacore); no-op on single-TC v5e/v6e.
            dimension_semantics=("parallel",),
            vmem_limit_bytes=vmem_limit,
        ),
        cost_estimate=cost,
    )(x0, h, w2d, b2d)

    if D_pad != D:
        out = out[:, :D]
    return out


if __name__ == "__main__":
    key = jax.random.PRNGKey(0)
    B, D = 24, 128  # batch, input_dim (lane-dense feature dim)

    k_x, k_h, k_w, _ = jax.random.split(key, 4)
    input_embeddings = jax.random.normal(k_x, (B, D), dtype=jnp.float32)
    hidden_states = jax.random.normal(k_h, (B, D), dtype=jnp.float32)
    # Mirrors Linear(D, 1, bias=False) weight shape; bias initialized to zeros.
    weight = jax.random.normal(k_w, (1, D), dtype=jnp.float32) * (1.0 / jnp.sqrt(D))
    bias = jnp.zeros((D,), dtype=jnp.float32)

    # Force a small batch tile so the demo actually exercises the multi-step
    # pipelined grid (grid = 3); production use leaves block_rows=None so the
    # tile is auto-sized against the generation's VMEM budget.
    out = cross_interaction_layer(input_embeddings, hidden_states, weight, bias,
                                  block_rows=8)
    out = jax.block_until_ready(out)

    # Reference check in plain JAX.
    ref = (hidden_states @ weight.T) * input_embeddings + bias
    assert out.shape == (B, D)
    assert jnp.allclose(out, ref, atol=1e-5, rtol=1e-5), "mismatch vs reference"

    # Also exercise the auto-sized (single full-extent block) path.
    out2 = jax.block_until_ready(
        cross_interaction_layer(input_embeddings, hidden_states, weight, bias))
    assert jnp.allclose(out2, ref, atol=1e-5, rtol=1e-5), "mismatch (auto tile)"

    print("KERNEL_OK")
</pallas_src>

<mosaic_0001>
module attributes {stable_mosaic.version = 11 : i64} {
  func.func @_cross_interaction_kernel(%arg0: i32, %arg1: memref<8x128xf32, #tpu.memory_space<vmem>>, %arg2: memref<8x128xf32, #tpu.memory_space<vmem>>, %arg3: memref<1x128xf32, #tpu.memory_space<vmem>>, %arg4: memref<1x128xf32, #tpu.memory_space<vmem>>, %arg5: memref<8x128xf32, #tpu.memory_space<vmem>>) attributes {dimension_semantics = [#tpu.dimension_semantics<parallel>], iteration_bounds = array<i64: 3>, scalar_prefetch = 0 : i64, scratch_operands = 0 : i64, tpu.core_type = #tpu.core_type<tc>, window_params = [{transform_indices = @transform_0, window_bounds = array<i64: 8, 128>}, {transform_indices = @transform_1, window_bounds = array<i64: 8, 128>}, {pipeline_mode = #tpu.pipeline_mode<synchronous>, transform_indices = @transform_2, window_bounds = array<i64: 1, 128>}, {pipeline_mode = #tpu.pipeline_mode<synchronous>, transform_indices = @transform_3, window_bounds = array<i64: 1, 128>}, {transform_indices = @transform_4, window_bounds = array<i64: 8, 128>}]} {
    %c0 = arith.constant 0 : index
    %c0_0 = arith.constant 0 : index
    %0 = vector.load %arg2[%c0, %c0_0] : memref<8x128xf32, #tpu.memory_space<vmem>>, vector<8x128xf32>
    %c0_1 = arith.constant 0 : index
    %c0_2 = arith.constant 0 : index
    %1 = vector.load %arg3[%c0_1, %c0_2] : memref<1x128xf32, #tpu.memory_space<vmem>>, vector<1x128xf32>
    %2 = vector.broadcast %1 : vector<1x128xf32> to vector<8x128xf32>
    %3 = arith.mulf %0, %2 : vector<8x128xf32>
    %cst = arith.constant dense<0.000000e+00> : vector<8xf32>
    %4 = vector.multi_reduction <add>, %3, %cst [1] : vector<8x128xf32> to vector<8xf32>
    %5 = vector.shape_cast %4 : vector<8xf32> to vector<8x1xf32>
    %c0_3 = arith.constant 0 : index
    %c0_4 = arith.constant 0 : index
    %6 = vector.load %arg1[%c0_3, %c0_4] : memref<8x128xf32, #tpu.memory_space<vmem>>, vector<8x128xf32>
    %7 = vector.broadcast %5 : vector<8x1xf32> to vector<8x128xf32>
    %8 = arith.mulf %7, %6 : vector<8x128xf32>
    %c0_5 = arith.constant 0 : index
    %c0_6 = arith.constant 0 : index
    %9 = vector.load %arg4[%c0_5, %c0_6] : memref<1x128xf32, #tpu.memory_space<vmem>>, vector<1x128xf32>
    %10 = vector.broadcast %9 : vector<1x128xf32> to vector<8x128xf32>
    %11 = arith.addf %8, %10 : vector<8x128xf32>
    %c0_7 = arith.constant 0 : index
    %c0_8 = arith.constant 0 : index
    %12 = vector.load %arg5[%c0_7, %c0_8] : memref<8x128xf32, #tpu.memory_space<vmem>>, vector<8x128xf32>
    tpu.vector_store %arg5[%c0_7, %c0_8], %11 {strides = array<i32>} : memref<8x128xf32, #tpu.memory_space<vmem>>, vector<8x128xf32>,
    return
  }
  func.func @transform_0(%arg0: i32) -> (i32, i32) {
    %c0_i32 = arith.constant 0 : i32
    %c0_i32_0 = arith.constant 0 : i32
    return %arg0, %c0_i32 : i32, i32
  }
  func.func @transform_1(%arg0: i32) -> (i32, i32) {
    %c0_i32 = arith.constant 0 : i32
    %c0_i32_0 = arith.constant 0 : i32
    return %arg0, %c0_i32 : i32, i32
  }
  func.func @transform_2(%arg0: i32) -> (i32, i32) {
    %c0_i32 = arith.constant 0 : i32
    %c0_i32_0 = arith.constant 0 : i32
    %c0_i32_1 = arith.constant 0 : i32
    return %c0_i32, %c0_i32_0 : i32, i32
  }
  func.func @transform_3(%arg0: i32) -> (i32, i32) {
    %c0_i32 = arith.constant 0 : i32
    %c0_i32_0 = arith.constant 0 : i32
    %c0_i32_1 = arith.constant 0 : i32
    return %c0_i32, %c0_i32_0 : i32, i32
  }
  func.func @transform_4(%arg0: i32) -> (i32, i32) {
    %c0_i32 = arith.constant 0 : i32
    %c0_i32_0 = arith.constant 0 : i32
    return %arg0, %c0_i32 : i32, i32
  }
}

</mosaic_0001>

<bundles_post_ra>
// kernel: tpu_custom_call.1
= control target key start
LH: loop header
LB: loop body
LE: loop exit
PB: predicated region body
PF: predicated region fallthrough
CT: control target
= control target key end

     0   :  { %s768_s0 = inlined_call_operand.hbm [shape: f32[24,128], index: 0, kind: input, shape index: {}]   ;;  %s769_s1 = inlined_call_operand.hbm [shape: f32[24,128], index: 1, kind: input, shape index: {}]   ;;  %s770_s2 = inlined_call_operand.vmem [shape: f32[1,128], index: 2, kind: input, shape index: {}]   ;;  %s771_s3 = inlined_call_operand.vmem [shape: f32[1,128], index: 3, kind: input, shape index: {}]   ;;  %s772_s4 = inlined_call_operand.hbm [shape: f32[24,128], index: 4, kind: output, shape index: {}]  }
   0x1   :  { %773 = sst [smem:[#allocation11_spill]] %s768_s0 }
   0x2   :  { %9 = vsyncpa [#allocation3], 0 }
   0x3   :  { %11 = vsyncpa [#allocation3 + $0x1], 0 }
   0x4   :  { %12 = vsyncpa [#allocation6], 0 }
   0x5   :  { %14 = vsyncpa [#allocation6 + $0x1], 0 }
   0x6   :  { %15 = vsyncpa [#allocation4], 0 }
   0x7   :  { %17 = vsyncpa [#allocation4 + $0x1], 0  ;;  %s604_s15 = smov 0   ;;  %s606_s16 = smov 0  }
   0x8   :  { %s608_s17 = smov 0   ;;  %s610_s18 = smov 0  }
   0x9 LB: > { %s625_s19 = sadd.s32 4294967295, %s577_s18   ;;  %s379_s20 = sadd.s32 4294967294, %s577_s18   ;;  %s577_s18 = sphi %s610_s18, %s784_s18   ;;  %s573_s17 = sphi %s608_s17, %s783_s17   ;;  %s569_s16 = sphi %s606_s16, %s782_s16   ;;  %s565_s15 = sphi %s604_s15, %s781_s15  }
   0xa   : > { %s629_s21 = sadd.s32 1, %s577_s18   ;;  %s30_s22 = sadd.s32 1, %s573_s17 }
   0xb   : > { %s27_s23 = ssub.s32 %s577_s18, %s629_s21  ;;  %p37_p0 = scmp.ne.s32.totalorder %s573_s17, %s569_s16 }
   0xc   : > { %p28_p1 = scmp.eq.s32.totalorder %s27_s23, 0  ;;  %p38_p2 = scmp.eq.s32.totalorder %s577_s18, 0 }
   0xd   : > { %p43_p3 = scmp.ne.s32.totalorder %s569_s16, %s565_s15  ;;  %p44_p4 = scmp.eq.s32.totalorder %s625_s19, 0 }
   0xe   : > { %s641_s24 = scalar_select %p28_p1, %s573_s17, %s30_s22  }
   0xf   : > { %p643_p5 = por %p38_p2, %p37_p0  ;;  %p647_p6 = por %p44_p4, %p43_p3 }
  0x10   : > { %p135_p7 = scmp.eq.s32.totalorder %s625_s19, 2  ;;  %p141_p8 = scmp.eq.s32.totalorder %s379_s20, 2 }
  0x11   : > { %p411_p9 = scmp.lt.s32.totalorder %s577_s18, 3  ;;  %s662_s29 = sand.u32 1, %s573_s17  }
  0x12   : > { %p653_p10 = por %p135_p7, %p37_p0  ;;  %p657_p11 = por %p141_p8, %p43_p3 }
  0x13   : > { %s383_s30 = sshll.u32 %s577_s18, 3  ;;  %s382_s5 = sshll.u32 %s662_s29, 3 }
  0x14   : > { %s778_s0 = sld [smem:[#allocation11_spill]]  ;;  %s171_s10 = scalar_lea.vmem [#allocation2], %s382_s5 }
  0x15   : > { %s179_s11 = sshll.u32 %s171_s10, 4  ;;  %p671_p12 = pnand %p411_p9, %p643_p5  ;;  %s180_s11 = int_to_ptr.vmem [resolvable:$true] %s179_s11 }
  0x16   : > { %p386_p13 = scmp.ge.s32.totalorder %s577_s18, 1  ;;  %p203_p0 = scmp.lt.s32.totalorder %s577_s18, 4 }
  0x17   : > { %s168_s13 = scalar_lea.sflag [#allocation3], %s662_s29  ;;  %p451_p2 = pneg %p671_p12 }
  0x1a   : > { %s175_s8 = scalar_lea.hbm %s778_s0, %s383_s30  ;;  %s454_s25 = scalar_lea.hbm %s778_s0, 24 }
  0x1b   : > { %s177_s9 = sshll.u32 %s175_s8, 4  ;;  %s178_s9 = int_to_ptr.hbm [resolvable:$true] %s177_s9 }
  0x1c   : > { %s447_s14 = sshra.s32 %s178_s9, 4  ;;  %s448_s14 = int_to_ptr.hbm [resolvable:$true] %s447_s14 }
  0x1d   : > { %s449_s20 = scalar_lea.hbm %s448_s14, 8  ;;  %p455_p5 = scmp.lt.s32.totalorder %s448_s14, %s778_s0 }
  0x1e   : > { %p450_p1 = scmp.ne.s32.totalorder %s448_s14, %s449_s20  ;;  %p456_p7 = scmp.lt.s32.totalorder %s454_s25, %s449_s20 }
  0x20   : > { %p452_p3 = pnand %p451_p2, %p450_p1  ;;  %p457_p8 = por %p456_p7, %p455_p5 }
  0x22   : > { %p453_p4 = pneg %p452_p3 }
  0x24   : > { %p458_p9 = pnand %p457_p8, %p453_p4 }
  0x26   : > { %461 = shalt.err (!%p458_p9)
}
  0x27   : > { %403 = dma.hbm_to_vmem [thread:$0]  (!%p671_p12), %s178_s9, 128, %s180_s11, %s168_s13  }
  0x28   : > { %p695_p1 = pnand %p386_p13, %p203_p0  ;;  %s194_s14 = scalar_lea.hbm %s769_s1, %s383_s30 }
  0x29   : > { %s196_s20 = sshll.u32 %s194_s14, 4  ;;  %s190_s23 = scalar_lea.vmem [#allocation5], %s382_s5  ;;  %s197_s20 = int_to_ptr.hbm [resolvable:$true] %s196_s20 }
  0x2a   : > { %s198_s25 = sshll.u32 %s190_s23, 4  ;;  %s187_s6 = scalar_lea.sflag [#allocation6], %s662_s29  ;;  %s199_s25 = int_to_ptr.vmem [resolvable:$true] %s198_s25 }
  0x2b   : > { %s477_s7 = sshra.s32 %s197_s20, 4  ;;  %s484_s13 = scalar_lea.hbm %s769_s1, 24  ;;  %s478_s7 = int_to_ptr.hbm [resolvable:$true] %s477_s7 }
  0x2c   : > { %s479_s0 = scalar_lea.hbm %s478_s7, 8  ;;  %p485_p4 = scmp.lt.s32.totalorder %s478_s7, %s769_s1 }
  0x2d   : > { %p480_p3 = scmp.ne.s32.totalorder %s478_s7, %s479_s0  ;;  %p486_p5 = scmp.lt.s32.totalorder %s484_s13, %s479_s0 }
  0x2f   : > { %p482_p13 = pnand %p480_p3, %p451_p2  ;;  %p487_p7 = por %p486_p5, %p485_p4 }
  0x31   : > { %p483_p0 = pneg %p482_p13 }
  0x33   : > { %p488_p8 = pnand %p487_p7, %p483_p0 }
  0x35   : > { %491 = shalt.err (!%p488_p8)
}
  0x36   : > { %406 = dma.hbm_to_vmem [thread:$0]  (!%p671_p12), %s197_s20, 128, %s199_s25, %s187_s6  }
  0x37   : > { %207 = sbr.rel (%p695_p1) target bundleno = 189 (0xbd), region = 36  ;;  %s717_s29 = sand.u32 (!%p695_p1), 1, %s569_s16  }
  0x38   : > { %s387_s5 = sshll.u32 (!%p695_p1), %s717_s29, 3  ;;  %s210_s22 = scalar_lea.sflag (!%p695_p1), [#allocation3], %s717_s29 }
  0x39   : > { %s213_s14 = scalar_lea.vmem (!%p695_p1), [#allocation2], %s387_s5 }
  0x3c   : > { %552 = dma.done.wait (%p647_p6), %s210_s22, 128  }
  0x3d   : > { %554 = vsyncadd (%p647_p6), %s210_s22, 4294967168  ;;  %s220_s0 = scalar_lea.sflag [#allocation6], %s717_s29  ;;  %s223_s12 = scalar_lea.vmem [#allocation5], %s387_s5 }
  0x3e   : > { %556 = dma.done.wait (%p647_p6), %s220_s0, 128  }
  0x3f   : > { %558 = vsyncadd (%p647_p6), %s220_s0, 4294967168  ;;  %v254_v0 = vld [vmem:[%s223_s12] sm:$0xff]  ;;  %v445_v1 = vld [vmem:[%s770_s2] ss:$0 sm:$0xff]  ;;  %s391_s23 = sshll.u32 %s625_s19, 3  ;;  %s253_s26 = scalar_lea.vmem [#allocation7], %s387_s5 }
  0x40   : > { %v259_v2 = vmul.f32 %v445_v1, %v254_v0  ;;  %s281_s7 = scalar_lea.hbm %s772_s4, %s391_s23  ;;  %v262_v3 = vld [vmem:[%s213_s14] sm:$0xff]  ;;  %s283_s13 = sshll.u32 %s253_s26, 4  ;;  %s284_s13 = int_to_ptr.vmem [resolvable:$true] %s283_s13 }
  0x41   : > { %v446_v4 = vld [vmem:[%s771_s3] ss:$0 sm:$0xff]  ;;  %s285_s10 = sshll.u32 %s281_s7, 4  ;;  %s271_s19 = scalar_lea.sflag [#allocation4], %s717_s29  ;;  %s286_s10 = int_to_ptr.hbm [resolvable:$true] %s285_s10 }
  0x42   : > { %260 = vadd.xlane.f32.xlu0 %v259_v2  ;;  %s521_s30 = sshra.s32 %s286_s10, 4  ;;  %s527_s12 = scalar_lea.hbm %s772_s4, 24  ;;  %s522_s30 = int_to_ptr.hbm [resolvable:$true] %s521_s30 }
  0x43   : > { %s523_s22 = scalar_lea.hbm %s522_s30, 8  ;;  %p528_p9 = scmp.lt.s32.totalorder %s522_s30, %s772_s4 }
  0x44   : > { %p524_p6 = scmp.ne.s32.totalorder %s522_s30, %s523_s22  ;;  %p529_p1 = scmp.lt.s32.totalorder %s527_s12, %s523_s22 }
  0x46   : > { %p525_p12 = pnand %p524_p6, %p653_p10  ;;  %p530_p3 = por %p529_p1, %p528_p9 }
  0x48   : > { %p526_p2 = pneg %p525_p12 }
  0x4a   : > { %p531_p13 = pnand %p530_p3, %p526_p2 }
  0xb5   : > { %v261_v5 = vpop.xlane.xlu0 %260 }
  0xb6   : > { %v263_v6 = vmul.f32 %v262_v3, %v261_v5 }
  0xb8   : > { %v268_v7 = vadd.f32 %v446_v4, %v263_v6 }
  0xba   : > { %269 = vst [vmem:[%s253_s26] sm:$0xff] %v268_v7 }
  0xbb   : > { %534 = shalt.err (!%p531_p13)
}
  0xbc   : > { %398 = dma.vmem_to_hbm [thread:$0]  (%p653_p10), %s284_s13, 128, %s286_s10, %s271_s19  }
  0xbd PF: > { %p412_p0 = scmp.ge.s32.totalorder %s577_s18, 2  ;;  %s297_s29 = sand.u32 1, %s565_s15  }
  0xbe   : > { %s298_s20 = scalar_lea.sflag [#allocation4], %s297_s29 }
  0xbf   : > { %p408_p4 = pnand %p412_p0, %p657_p11 }
  0xc1   : > { %p409_p5 = pneg %p408_p4 }
  0xc3   : > { %560 = dma.done.wait (%p409_p5), %s298_s20, 128  }
  0xc4   : > { %562 = vsyncadd (%p409_p5), %s298_s20, 4294967168  ;;  %p20_p7 = scmp.ge.s32.totalorder %s629_s21, 5   ;;  %s781_s15 = smov %s569_s16 }
  0xc5   : > { %s782_s16 = smov %s573_s17  ;;  %s783_s17 = smov %s641_s24 }
  0xc6   : > { %s784_s18 = smov %s629_s21  ;;  %22 = sbr.rel (!%p20_p7) target bundleno = 9 (0x9), region = 94 }
  0xcb   :  { %304 = vsyncpa [#allocation3], 1 }
  0xcc   :  { %306 = vsyncpa [#allocation3 + $0x1], 1 }
  0xcd   :  { %307 = vsyncpa [#allocation6], 1 }
  0xce   :  { %309 = vsyncpa [#allocation6 + $0x1], 1 }
  0xcf   :  { %310 = vsyncpa [#allocation4], 1 }
  0xd0   :  { %312 = vsyncpa [#allocation4 + $0x1], 1 }

</bundles_post_ra>
